<compile_context>
chip_gen: v7x
topology: tpu7x:2x2x1
jax: 0.10.0
libtpu: 0.0.40
codegen_flags: <defaults>
</compile_context>

<pallas_src>
import jax
import jax.numpy as jnp
from jax.experimental import pallas as pl
from jax.experimental.pallas import tpu as pltpu


def _round_up(x, m):
    return (x + m - 1) // m * m


def _estimate_vmem_bytes(TP, A, C, CNB, F, cbytes):
    """Rough upper bound on live VMEM: double-buffered streams, resident
    weights, scratch and in-flight temporaries."""
    dbuf = 2
    streams = dbuf * (2 * 8 * TP * 4          # idx_i / idx_j (1, TP) -> 8 sublanes
                      + TP * CNB * 4          # pre-expanded basis tile
                      + TP * F * 4)           # i1 output tile
    resident = dbuf * ((A * C + 2 * C * CNB + 8 * CNB + CNB * F) * 4
                       + A * F * 4)           # p1 + weights + per-split acc block
    scratch = 2 * A * CNB * cbytes            # g_a, g_b
    temps = 2 * A * TP * cbytes + 3 * TP * CNB * 4 + 2 * TP * F * 4
    return streams + resident + scratch + temps


# ----------------------------------------------------------------------------
# Fused kernel: PILayer (gather + Linear + tanh + basis contraction)
#               + ii Linear + tanh + IPLayer scatter (per-split partial sums)
# ----------------------------------------------------------------------------
def _invar_kernel(idx_i_ref, idx_j_ref, basis_ref,
                  p1_ref, w_pi_a_ref, w_pi_b_ref, b_pi_ref, w_sel_ii_ref,
                  i1_ref, acc_ref,
                  g_a_ref, g_b_ref):
    k = pl.program_id(1)                       # pair-tile loop ("arbitrary")
    A = p1_ref.shape[0]
    TP = basis_ref.shape[0]
    cdt = g_a_ref.dtype                        # compute dtype of one-hot matmuls

    # One-time (per core-split) precompute: p1 @ w_pi halves; zero the per-split
    # scatter accumulator that lives in the resident output block.
    @pl.when(k == 0)
    def _init():
        g_a_ref[...] = jnp.dot(p1_ref[...], w_pi_a_ref[...],
                               preferred_element_type=jnp.float32).astype(cdt)
        g_b_ref[...] = jnp.dot(p1_ref[...], w_pi_b_ref[...],
                               preferred_element_type=jnp.float32).astype(cdt)
        acc_ref[...] = jnp.zeros_like(acc_ref)

    # (A, TP) one-hots in compute dtype (0/1 exact in bf16).  Padded pairs carry
    # index -1 -> all-zero columns -> no gather/scatter contribution.
    oh_i = (jax.lax.broadcasted_iota(jnp.int32, (A, TP), 0)
            == idx_i_ref[...]).astype(cdt)
    oh_j = (jax.lax.broadcasted_iota(jnp.int32, (A, TP), 0)
            == idx_j_ref[...]).astype(cdt)

    # PILayer gather + Linear(2C -> C*NB): one-hot^T @ (p1 @ w) on the MXU
    # (dot_general contracting dim 0 of both operands, f32 accumulation).
    g_i = jax.lax.dot_general(oh_i, g_a_ref[...], (((0,), (0,)), ((), ())),
                              preferred_element_type=jnp.float32)    # (TP, CNB)
    g_j = jax.lax.dot_general(oh_j, g_b_ref[...], (((0,), (0,)), ((), ())),
                              preferred_element_type=jnp.float32)    # (TP, CNB)
    h = jnp.tanh(g_i + g_j + b_pi_ref[...])                          # (TP, CNB) f32

    # 'icb,ib->ic' basis contraction folded into the ii weight; basis arrives
    # pre-expanded to (TP, C*NB) lanes (padded rows are zero -> i1 row = 0).
    i1 = jnp.tanh(jnp.dot(h * basis_ref[...], w_sel_ii_ref[...],
                          preferred_element_type=jnp.float32))        # (TP, F)
    i1_ref[...] = i1

    # IPLayer (torch.index_add over pair_i): reuse oh_i as the scatter one-hot.
    acc_ref[...] += jnp.dot(oh_i, i1.astype(cdt),
                            preferred_element_type=jnp.float32)       # (A, F)


# ----------------------------------------------------------------------------
# Wrapper: padding / weight folds / A-aware tiling / megacore split / epilogue
# ----------------------------------------------------------------------------
def invar_layer_forward(params, p1, pair_i, pair_j, basis, *,
                        tile_pairs=2048, num_splits=2,
                        compute_dtype=jnp.bfloat16):
    A, _, C = p1.shape
    P = pair_i.shape[0]
    NB = basis.shape[-1]
    CNB = params['w_pi'].shape[1]
    F = params['w_ii'].shape[1]
    G = params['w_pp'].shape[1]
    A_pad = _round_up(A, 8)
    cbytes = jnp.dtype(compute_dtype).itemsize

    # ---- VMEM budget (A-aware tile sizing + computed vmem limit) -------------
    try:
        capacity = int(getattr(pltpu.get_tpu_info(), "vmem_capacity_bytes", 64 << 20))
    except Exception:
        capacity = 64 << 20                    # conservative default (v7x per-core)
    budget = int(0.55 * capacity)

    TP = _round_up(max(min(tile_pairs, _round_up(P, 128)), 128), 128)
    while TP > 128 and _estimate_vmem_bytes(TP, A_pad, C, CNB, F, cbytes) > budget:
        TP = _round_up(TP // 2, 128)

    if _round_up(P, 8) <= min(TP, 512):
        TP = max(8, _round_up(P, 8))           # single full tile, no 128 padding
        n_splits, n_tiles = 1, 1
    else:
        n_splits = max(1, int(num_splits))
        TP = min(TP, _round_up(pl.cdiv(P, n_splits), 128))
        n_tiles = _round_up(pl.cdiv(P, TP), n_splits)
    K = n_tiles // n_splits
    P_pad = TP * n_tiles
    pad = P_pad - P

    # ---- host-side packing (padding invariant: idx = -1 AND basis row = 0) ---
    idx_i = jnp.pad(pair_i.astype(jnp.int32), (0, pad),
                    constant_values=-1).reshape(1, P_pad)
    idx_j = jnp.pad(pair_j.astype(jnp.int32), (0, pad),
                    constant_values=-1).reshape(1, P_pad)
    basis_exp = jnp.tile(jnp.pad(basis.astype(jnp.float32), ((0, pad), (0, 0))),
                         (1, C))                                   # lane c*NB + b

    p1_2d = jnp.pad(p1[:, 0, :].astype(jnp.float32), ((0, A_pad - A), (0, 0)))
    w_pi_a = params['w_pi'][:C]                                    # (C, C*NB)
    w_pi_b = params['w_pi'][C:]                                    # (C, C*NB)
    w_sel_ii = jnp.repeat(params['w_ii'], NB, axis=0)              # folds 'icb,ib->ic'

    grid_spec = pltpu.PrefetchScalarGridSpec(
        num_scalar_prefetch=0,
        grid=(n_splits, K),
        in_specs=[
            pl.BlockSpec((1, TP), lambda i, k: (0, i * K + k)),    # pair_i (lane-major)
            pl.BlockSpec((1, TP), lambda i, k: (0, i * K + k)),    # pair_j (lane-major)
            pl.BlockSpec((TP, CNB), lambda i, k: (i * K + k, 0)),  # basis (pre-expanded)
            pl.BlockSpec((A_pad, C), lambda i, k: (0, 0)),         # p1 (resident)
            pl.BlockSpec((C, CNB), lambda i, k: (0, 0)),           # w_pi[:C]
            pl.BlockSpec((C, CNB), lambda i, k: (0, 0)),           # w_pi[C:]
            pl.BlockSpec((1, CNB), lambda i, k: (0, 0)),           # b_pi
            pl.BlockSpec((CNB, F), lambda i, k: (0, 0)),           # w_sel_ii
        ],
        out_specs=(
            pl.BlockSpec((TP, F), lambda i, k: (i * K + k, 0)),    # i1 per pair tile
            pl.BlockSpec((A_pad, F), lambda i, k: (i, 0)),         # per-split scatter acc
        ),
        scratch_shapes=[
            pltpu.VMEM((A_pad, CNB), compute_dtype),               # g_a = p1 @ w_pi[:C]
            pltpu.VMEM((A_pad, CNB), compute_dtype),               # g_b = p1 @ w_pi[C:]
        ],
    )

    est = _estimate_vmem_bytes(TP, A_pad, C, CNB, F, cbytes)
    vmem_limit = int(min(max(2 * est + (8 << 20), 32 << 20), int(0.9 * capacity)))

    flops = (n_splits * 2 * A_pad * C * CNB * 2       # g_a, g_b (once per split)
             + 2 * P_pad * A_pad * CNB * 2            # one-hot gather matmuls
             + 2 * P_pad * CNB * F                    # ii matmul
             + 2 * P_pad * A_pad * F)                 # one-hot scatter matmul
    transcendentals = P_pad * (CNB + F)
    bytes_accessed = (4 * (P_pad * CNB + P_pad * F + n_splits * A_pad * F
                           + A_pad * C + 2 * C * CNB + CNB + CNB * F)
                      + 8 * P_pad)

    i1_full, acc_part = pl.pallas_call(
        _invar_kernel,
        out_shape=(jax.ShapeDtypeStruct((P_pad, F), jnp.float32),
                   jax.ShapeDtypeStruct((n_splits * A_pad, F), jnp.float32)),
        grid_spec=grid_spec,
        compiler_params=pltpu.CompilerParams(
            dimension_semantics=("parallel", "arbitrary"),   # splits -> both v7x TCs
            vmem_limit_bytes=vmem_limit,
        ),
        cost_estimate=pl.CostEstimate(flops=flops,
                                      transcendentals=transcendentals,
                                      bytes_accessed=bytes_accessed),
    )(idx_i, idx_j, basis_exp, p1_2d, w_pi_a, w_pi_b,
      params['b_pi'], w_sel_ii)

    # Tiny epilogue: combine per-split partial atom sums, then pp Linear + tanh.
    hp = jax.lax.Precision.HIGHEST
    acc = acc_part.reshape(n_splits, A_pad, F).sum(axis=0)[:A]
    p1_out = jnp.tanh(jnp.dot(acc, params['w_pp'], precision=hp) + params['b_pp'])

    # restore the PyTorch (rows, 1, channels) shapes; drop pair padding
    return p1_out[:, None, :], i1_full[:P, None, :]


def init_params(key, C, NB, F, G):
    ks = jax.random.split(key, 5)
    s = 0.1
    return dict(
        # PILayer mlp: Linear(2C -> C*NB), bias=True, tanh
        w_pi=jax.random.normal(ks[0], (2 * C, C * NB), jnp.float32) * s,
        b_pi=jax.random.normal(ks[1], (1, C * NB), jnp.float32) * s,
        # ii FeedForward: Linear(C -> F), bias=False, tanh
        w_ii=jax.random.normal(ks[2], (C, F), jnp.float32) * s,
        # pp FeedForward: Linear(F -> G), bias=True, tanh
        w_pp=jax.random.normal(ks[3], (F, G), jnp.float32) * s,
        b_pp=jax.random.normal(ks[4], (1, G), jnp.float32) * s,
    )


# ----------------------------------------------------------------------------
# Pure-JAX reference (mirrors the PyTorch InvarLayer.forward exactly)
# ----------------------------------------------------------------------------
def reference_forward(params, p1, pair_i, pair_j, basis):
    hp = jax.lax.Precision.HIGHEST
    C = p1.shape[-1]
    NB = basis.shape[-1]
    F = params['w_ii'].shape[1]
    p1_2d = p1[:, 0, :]
    inter = jnp.concatenate([p1_2d[pair_i], p1_2d[pair_j]], axis=-1)        # (P, 2C)
    inter = jnp.tanh(jnp.dot(inter, params['w_pi'], precision=hp) + params['b_pi'])
    inter = jnp.einsum('icb,ib->ic', inter.reshape(-1, C, NB), basis, precision=hp)
    i1 = inter[:, None, :]                                                  # (P, 1, C)
    i1 = jnp.tanh(jnp.dot(i1, params['w_ii'], precision=hp))                # (P, 1, F)
    p1n = jnp.zeros((p1.shape[0], 1, F), p1.dtype).at[pair_i].add(i1)       # IPLayer
    p1n = jnp.tanh(jnp.dot(p1n, params['w_pp'], precision=hp) + params['b_pp'])
    return (p1n, i1)


if __name__ == "__main__":
    # small shapes consistent with the module: pi_nodes=[16, 64], ii_nodes=[16, 16],
    # pp_nodes=[16, 16], radial basis size 4
    A, P, C, NB = 8, 20, 16, 4        # atoms, pairs, channels, basis size
    F, G = 16, 16                     # ii_nodes[-1], pp_nodes[-1]

    key = jax.random.PRNGKey(0)
    kp, k1, k2, k3, k4 = jax.random.split(key, 5)
    params = init_params(kp, C, NB, F, G)

    p1 = jax.random.normal(k1, (A, 1, C), jnp.float32)
    basis = jax.random.normal(k2, (P, NB), jnp.float32)
    pair_i = jax.random.randint(k3, (P,), 0, A, jnp.int32)
    pair_j = jax.random.randint(k4, (P,), 0, A, jnp.int32)

    ref = reference_forward(params, p1, pair_i, pair_j, basis)

    # exact path (f32 one-hot matmuls) — strict check against the reference math
    out_f32 = invar_layer_forward(params, p1, pair_i, pair_j, basis,
                                  compute_dtype=jnp.float32)
    out_f32 = jax.block_until_ready(out_f32)
    for a, b in zip(jax.tree_util.tree_leaves(out_f32), jax.tree_util.tree_leaves(ref)):
        assert a.shape == b.shape, (a.shape, b.shape)
        assert jnp.allclose(a, b, rtol=1e-3, atol=1e-3), float(jnp.abs(a - b).max())

    # default fast path (bf16 one-hot / gather / scatter operands, f32 accumulation)
    out_bf16 = invar_layer_forward(params, p1, pair_i, pair_j, basis)
    out_bf16 = jax.block_until_ready(out_bf16)
    for a, b in zip(jax.tree_util.tree_leaves(out_bf16), jax.tree_util.tree_leaves(ref)):
        assert a.shape == b.shape, (a.shape, b.shape)
        assert jnp.allclose(a, b, rtol=1e-2, atol=1e-2), float(jnp.abs(a - b).max())

    print("KERNEL_OK")
</pallas_src>

<mosaic_0001>
module attributes {stable_mosaic.version = 11 : i64} {
  func.func @_invar_kernel(%arg0: i32, %arg1: i32, %arg2: memref<1x24xi32, #tpu.memory_space<vmem>>, %arg3: memref<1x24xi32, #tpu.memory_space<vmem>>, %arg4: memref<24x64xf32, #tpu.memory_space<vmem>>, %arg5: memref<8x16xf32, #tpu.memory_space<vmem>>, %arg6: memref<16x64xf32, #tpu.memory_space<vmem>>, %arg7: memref<16x64xf32, #tpu.memory_space<vmem>>, %arg8: memref<1x64xf32, #tpu.memory_space<vmem>>, %arg9: memref<64x16xf32, #tpu.memory_space<vmem>>, %arg10: memref<24x16xf32, #tpu.memory_space<vmem>>, %arg11: memref<8x16xf32, #tpu.memory_space<vmem>>, %arg12: memref<8x64xf32, #tpu.memory_space<vmem>>, %arg13: memref<8x64xf32, #tpu.memory_space<vmem>>) attributes {dimension_semantics = [#tpu.dimension_semantics<parallel>, #tpu.dimension_semantics<arbitrary>], iteration_bounds = array<i64: 1, 1>, scalar_prefetch = 0 : i64, scratch_operands = 2 : i64, tpu.core_type = #tpu.core_type<tc>, window_params = [{transform_indices = @transform_0, window_bounds = array<i64: 1, 24>}, {transform_indices = @transform_1, window_bounds = array<i64: 1, 24>}, {transform_indices = @transform_2, window_bounds = array<i64: 24, 64>}, {pipeline_mode = #tpu.pipeline_mode<synchronous>, transform_indices = @transform_3, window_bounds = array<i64: 8, 16>}, {pipeline_mode = #tpu.pipeline_mode<synchronous>, transform_indices = @transform_4, window_bounds = array<i64: 16, 64>}, {pipeline_mode = #tpu.pipeline_mode<synchronous>, transform_indices = @transform_5, window_bounds = array<i64: 16, 64>}, {pipeline_mode = #tpu.pipeline_mode<synchronous>, transform_indices = @transform_6, window_bounds = array<i64: 1, 64>}, {pipeline_mode = #tpu.pipeline_mode<synchronous>, transform_indices = @transform_7, window_bounds = array<i64: 64, 16>}, {transform_indices = @transform_8, window_bounds = array<i64: 24, 16>}, {transform_indices = @transform_9, window_bounds = array<i64: 8, 16>}]} {
    %c0_i32 = arith.constant 0 : i32
    %0 = arith.cmpi eq, %arg1, %c0_i32 : i32
    %1 = arith.extui %0 : i1 to i32
    %c0_i32_0 = arith.constant 0 : i32
    %2 = arith.cmpi ne, %1, %c0_i32_0 : i32
    scf.if %2 {
      %c0_23 = arith.constant 0 : index
      %c0_24 = arith.constant 0 : index
      %34 = vector.load %arg5[%c0_23, %c0_24] : memref<8x16xf32, #tpu.memory_space<vmem>>, vector<8x16xf32>
      %c0_25 = arith.constant 0 : index
      %c0_26 = arith.constant 0 : index
      %35 = vector.load %arg6[%c0_25, %c0_26] : memref<16x64xf32, #tpu.memory_space<vmem>>, vector<16x64xf32>
      %cst_27 = arith.constant dense<0.000000e+00> : vector<8x64xf32>
      %36 = tpu.matmul %34, %35, %cst_27 {dimension_numbers = #tpu.dot_dimension_numbers<[1], [0], [0], [1], [0, 0, 1, 1], [], []>} : vector<8x16xf32>, vector<16x64xf32>, vector<8x64xf32> -> vector<8x64xf32>
      %c0_28 = arith.constant 0 : index
      %c0_29 = arith.constant 0 : index
      %37 = vector.load %arg12[%c0_28, %c0_29] : memref<8x64xf32, #tpu.memory_space<vmem>>, vector<8x64xf32>
      tpu.vector_store %arg12[%c0_28, %c0_29], %36 {strides = array<i32>} : memref<8x64xf32, #tpu.memory_space<vmem>>, vector<8x64xf32>,
      %c0_30 = arith.constant 0 : index
      %c0_31 = arith.constant 0 : index
      %38 = vector.load %arg5[%c0_30, %c0_31] : memref<8x16xf32, #tpu.memory_space<vmem>>, vector<8x16xf32>
      %c0_32 = arith.constant 0 : index
      %c0_33 = arith.constant 0 : index
      %39 = vector.load %arg7[%c0_32, %c0_33] : memref<16x64xf32, #tpu.memory_space<vmem>>, vector<16x64xf32>
      %cst_34 = arith.constant dense<0.000000e+00> : vector<8x64xf32>
      %40 = tpu.matmul %38, %39, %cst_34 {dimension_numbers = #tpu.dot_dimension_numbers<[1], [0], [0], [1], [0, 0, 1, 1], [], []>} : vector<8x16xf32>, vector<16x64xf32>, vector<8x64xf32> -> vector<8x64xf32>
      %c0_35 = arith.constant 0 : index
      %c0_36 = arith.constant 0 : index
      %41 = vector.load %arg13[%c0_35, %c0_36] : memref<8x64xf32, #tpu.memory_space<vmem>>, vector<8x64xf32>
      tpu.vector_store %arg13[%c0_35, %c0_36], %40 {strides = array<i32>} : memref<8x64xf32, #tpu.memory_space<vmem>>, vector<8x64xf32>,
      %cst_37 = arith.constant 0.000000e+00 : f32
      %42 = vector.broadcast %cst_37 : f32 to vector<8x16xf32>
      %c0_38 = arith.constant 0 : index
      %c0_39 = arith.constant 0 : index
      %43 = vector.load %arg11[%c0_38, %c0_39] : memref<8x16xf32, #tpu.memory_space<vmem>>, vector<8x16xf32>
      tpu.vector_store %arg11[%c0_38, %c0_39], %42 {strides = array<i32>} : memref<8x16xf32, #tpu.memory_space<vmem>>, vector<8x16xf32>,
    } else {
    }
    %3 = tpu.iota {dimensions = array<i32: 0>} : vector<8x24xi32>
    %c0 = arith.constant 0 : index
    %c0_1 = arith.constant 0 : index
    %4 = vector.load %arg2[%c0, %c0_1] : memref<1x24xi32, #tpu.memory_space<vmem>>, vector<1x24xi32>
    %5 = vector.broadcast %4 : vector<1x24xi32> to vector<8x24xi32>
    %6 = arith.cmpi eq, %3, %5 : vector<8x24xi32>
    %7 = arith.extui %6 : vector<8x24xi1> to vector<8x24xi32>
    %8 = arith.sitofp %7 : vector<8x24xi32> to vector<8x24xf32>
    %9 = tpu.iota {dimensions = array<i32: 0>} : vector<8x24xi32>
    %c0_2 = arith.constant 0 : index
    %c0_3 = arith.constant 0 : index
    %10 = vector.load %arg3[%c0_2, %c0_3] : memref<1x24xi32, #tpu.memory_space<vmem>>, vector<1x24xi32>
    %11 = vector.broadcast %10 : vector<1x24xi32> to vector<8x24xi32>
    %12 = arith.cmpi eq, %9, %11 : vector<8x24xi32>
    %13 = arith.extui %12 : vector<8x24xi1> to vector<8x24xi32>
    %14 = arith.sitofp %13 : vector<8x24xi32> to vector<8x24xf32>
    %c0_4 = arith.constant 0 : index
    %c0_5 = arith.constant 0 : index
    %15 = vector.load %arg12[%c0_4, %c0_5] : memref<8x64xf32, #tpu.memory_space<vmem>>, vector<8x64xf32>
    %cst = arith.constant dense<0.000000e+00> : vector<24x64xf32>
    %16 = tpu.matmul %8, %15, %cst {dimension_numbers = #tpu.dot_dimension_numbers<[0], [0], [1], [1], [0, 1, 1, 1], [], []>} : vector<8x24xf32>, vector<8x64xf32>, vector<24x64xf32> -> vector<24x64xf32>
    %c0_6 = arith.constant 0 : index
    %c0_7 = arith.constant 0 : index
    %17 = vector.load %arg13[%c0_6, %c0_7] : memref<8x64xf32, #tpu.memory_space<vmem>>, vector<8x64xf32>
    %cst_8 = arith.constant dense<0.000000e+00> : vector<24x64xf32>
    %18 = tpu.matmul %14, %17, %cst_8 {dimension_numbers = #tpu.dot_dimension_numbers<[0], [0], [1], [1], [0, 1, 1, 1], [], []>} : vector<8x24xf32>, vector<8x64xf32>, vector<24x64xf32> -> vector<24x64xf32>
    %19 = arith.addf %16, %18 : vector<24x64xf32>
    %c0_9 = arith.constant 0 : index
    %c0_10 = arith.constant 0 : index
    %20 = vector.load %arg8[%c0_9, %c0_10] : memref<1x64xf32, #tpu.memory_space<vmem>>, vector<1x64xf32>
    %21 = vector.broadcast %20 : vector<1x64xf32> to vector<24x64xf32>
    %22 = arith.addf %19, %21 : vector<24x64xf32>
    %23 = math.tanh %22 : vector<24x64xf32>
    %c0_11 = arith.constant 0 : index
    %c0_12 = arith.constant 0 : index
    %24 = vector.load %arg4[%c0_11, %c0_12] : memref<24x64xf32, #tpu.memory_space<vmem>>, vector<24x64xf32>
    %25 = arith.mulf %23, %24 : vector<24x64xf32>
    %c0_13 = arith.constant 0 : index
    %c0_14 = arith.constant 0 : index
    %26 = vector.load %arg9[%c0_13, %c0_14] : memref<64x16xf32, #tpu.memory_space<vmem>>, vector<64x16xf32>
    %cst_15 = arith.constant dense<0.000000e+00> : vector<24x16xf32>
    %27 = tpu.matmul %25, %26, %cst_15 {dimension_numbers = #tpu.dot_dimension_numbers<[1], [0], [0], [1], [0, 0, 1, 1], [], []>} : vector<24x64xf32>, vector<64x16xf32>, vector<24x16xf32> -> vector<24x16xf32>
    %28 = math.tanh %27 : vector<24x16xf32>
    %c0_16 = arith.constant 0 : index
    %c0_17 = arith.constant 0 : index
    %29 = vector.load %arg10[%c0_16, %c0_17] : memref<24x16xf32, #tpu.memory_space<vmem>>, vector<24x16xf32>
    tpu.vector_store %arg10[%c0_16, %c0_17], %28 {strides = array<i32>} : memref<24x16xf32, #tpu.memory_space<vmem>>, vector<24x16xf32>,
    %c0_18 = arith.constant 0 : index
    %c0_19 = arith.constant 0 : index
    %30 = vector.load %arg11[%c0_18, %c0_19] : memref<8x16xf32, #tpu.memory_space<vmem>>, vector<8x16xf32>
    %cst_20 = arith.constant dense<0.000000e+00> : vector<8x16xf32>
    %31 = tpu.matmul %8, %28, %cst_20 {dimension_numbers = #tpu.dot_dimension_numbers<[1], [0], [0], [1], [0, 0, 1, 1], [], []>} : vector<8x24xf32>, vector<24x16xf32>, vector<8x16xf32> -> vector<8x16xf32>
    %32 = arith.addf %30, %31 : vector<8x16xf32>
    %c0_21 = arith.constant 0 : index
    %c0_22 = arith.constant 0 : index
    %33 = vector.load %arg11[%c0_21, %c0_22] : memref<8x16xf32, #tpu.memory_space<vmem>>, vector<8x16xf32>
    tpu.vector_store %arg11[%c0_21, %c0_22], %32 {strides = array<i32>} : memref<8x16xf32, #tpu.memory_space<vmem>>, vector<8x16xf32>,
    return
  }
  func.func @transform_0(%arg0: i32, %arg1: i32) -> (i32, i32) {
    %c1_i32 = arith.constant 1 : i32
    %0 = arith.muli %arg0, %c1_i32 : i32
    %1 = arith.addi %0, %arg1 : i32
    %c0_i32 = arith.constant 0 : i32
    %c0_i32_0 = arith.constant 0 : i32
    return %c0_i32, %1 : i32, i32
  }
  func.func @transform_1(%arg0: i32, %arg1: i32) -> (i32, i32) {
    %c1_i32 = arith.constant 1 : i32
    %0 = arith.muli %arg0, %c1_i32 : i32
    %1 = arith.addi %0, %arg1 : i32
    %c0_i32 = arith.constant 0 : i32
    %c0_i32_0 = arith.constant 0 : i32
    return %c0_i32, %1 : i32, i32
  }
  func.func @transform_2(%arg0: i32, %arg1: i32) -> (i32, i32) {
    %c1_i32 = arith.constant 1 : i32
    %0 = arith.muli %arg0, %c1_i32 : i32
    %1 = arith.addi %0, %arg1 : i32
    %c0_i32 = arith.constant 0 : i32
    %c0_i32_0 = arith.constant 0 : i32
    return %1, %c0_i32 : i32, i32
  }
  func.func @transform_3(%arg0: i32, %arg1: i32) -> (i32, i32) {
    %c0_i32 = arith.constant 0 : i32
    %c0_i32_0 = arith.constant 0 : i32
    %c0_i32_1 = arith.constant 0 : i32
    return %c0_i32, %c0_i32_0 : i32, i32
  }
  func.func @transform_4(%arg0: i32, %arg1: i32) -> (i32, i32) {
    %c0_i32 = arith.constant 0 : i32
    %c0_i32_0 = arith.constant 0 : i32
    %c0_i32_1 = arith.constant 0 : i32
    return %c0_i32, %c0_i32_0 : i32, i32
  }
  func.func @transform_5(%arg0: i32, %arg1: i32) -> (i32, i32) {
    %c0_i32 = arith.constant 0 : i32
    %c0_i32_0 = arith.constant 0 : i32
    %c0_i32_1 = arith.constant 0 : i32
    return %c0_i32, %c0_i32_0 : i32, i32
  }
  func.func @transform_6(%arg0: i32, %arg1: i32) -> (i32, i32) {
    %c0_i32 = arith.constant 0 : i32
    %c0_i32_0 = arith.constant 0 : i32
    %c0_i32_1 = arith.constant 0 : i32
    return %c0_i32, %c0_i32_0 : i32, i32
  }
  func.func @transform_7(%arg0: i32, %arg1: i32) -> (i32, i32) {
    %c0_i32 = arith.constant 0 : i32
    %c0_i32_0 = arith.constant 0 : i32
    %c0_i32_1 = arith.constant 0 : i32
    return %c0_i32, %c0_i32_0 : i32, i32
  }
  func.func @transform_8(%arg0: i32, %arg1: i32) -> (i32, i32) {
    %c1_i32 = arith.constant 1 : i32
    %0 = arith.muli %arg0, %c1_i32 : i32
    %1 = arith.addi %0, %arg1 : i32
    %c0_i32 = arith.constant 0 : i32
    %c0_i32_0 = arith.constant 0 : i32
    return %1, %c0_i32 : i32, i32
  }
  func.func @transform_9(%arg0: i32, %arg1: i32) -> (i32, i32) {
    %c0_i32 = arith.constant 0 : i32
    %c0_i32_0 = arith.constant 0 : i32
    return %arg0, %c0_i32 : i32, i32
  }
}

</mosaic_0001>

<bundles_post_ra>
// kernel: tpu_custom_call.1
= control target key start
LH: loop header
LB: loop body
LE: loop exit
PB: predicated region body
PF: predicated region fallthrough
CT: control target
= control target key end

     0   :  { %v257_v2 = vlaneseq  ;;  %v967_v3 = vmov 0.0|0.0   ;;  %vm968_vm0 = vmmov 0   ;;  %v969_v5 = vmov 0.0   ;;  %s1158_s0 = inlined_call_operand.vmem [shape: s32[1,24], index: 0, kind: input, shape index: {}]   ;;  %s1159_s1 = inlined_call_operand.vmem [shape: s32[1,24], index: 1, kind: input, shape index: {}]   ;;  %s1160_s2 = inlined_call_operand.vmem [shape: f32[24,64], index: 2, kind: input, shape index: {}]   ;;  %s1161_s3 = inlined_call_operand.vmem [shape: f32[8,16], index: 3, kind: input, shape index: {}]   ;;  %s1162_s4 = inlined_call_operand.vmem [shape: f32[16,64], index: 4, kind: input, shape index: {}]   ;;  %s1163_s5 = inlined_call_operand.vmem [shape: f32[16,64], index: 5, kind: input, shape index: {}]   ;;  %s1164_s6 = inlined_call_operand.vmem [shape: f32[1,64], index: 6, kind: input, shape index: {}]   ;;  %s1165_s7 = inlined_call_operand.vmem [shape: f32[64,16], index: 7, kind: input, shape index: {}]   ;;  %s1166_s8 = inlined_call_operand.vmem [shape: f32[24,16], index: 8, kind: output, shape index: {0}]   ;;  %s1167_s9 = inlined_call_operand.hbm [shape: f32[8,16], index: 9, kind: output, shape index: {1}]  }
   0x1   :  { %v101_v0 = vld [vmem:[%s1162_s4] sm:$0xff]  ;;  %v102_v1 = vld [vmem:[%s1162_s4 + $0x8] sm:$0xff]  ;;  %889 = vmatprep.subr.bf16.mxu1 %v967_v3  ;;  %823 = vmatprep.mubr.msk.f32.mxu1 %vm968_vm0, %v969_v5  ;;  %vm103_vm1 = vcmask 130048  }
   0x2   :  { %v890_v4 = vpack.c.bf16 %v102_v1, %v101_v0  ;;  %v180_v6 = vld [vmem:[%s1163_s5] sm:$0xff]  ;;  %v181_v7 = vld [vmem:[%s1163_s5 + $0x8] sm:$0xff]  ;;  %256 = vst.msk [vmem:[#allocation4] sm:$0xff] %vm103_vm1, %v969_v5  ;;  %v258_v9 = vshrl.u32 %v257_v2, 7  ;;  %833 = vmatprep.subr.mxu0 %v969_v5  ;;  %835 = vmatprep.mubr.msk.f32.mxu0 %vm968_vm0, %v969_v5 }
   0x3   :  { %v775_v8 = vld [vmem:[%s1158_s0] ss:$0 sm:$0xff] }
   0x4   :  { %v777_v10 = vld [vmem:[%s1159_s1] ss:$0 sm:$0xff] }
   0x5   :  { %15 = vsyncpa [#allocation5], 0  ;;  %891 = vmatpush3.bf16.msra.mxu1 %v890_v4  ;;  %v100_v11 = vld [vmem:[%s1161_s3] sm:$0xff]  ;;  %v893_v12 = vpack.c.bf16 %v181_v7, %v180_v6  ;;  %vm264_vm2 = vcmp.eq.s32.totalorder %v258_v9, %v775_v8  ;;  %vm272_vm3 = vcmp.eq.s32.totalorder %v258_v9, %v777_v10  ;;  %vm177_vm4 = vcmask 523264   ;;  %v540_v32 = vld [vmem:[%s1165_s7 + $0x8] sm:$0xff]  ;;  %s970_s1 = smov [#allocation4]  }
   0x6   :  { %892 = vmatprep.subr.bf16.mxu1 %v967_v3  ;;  %v1052_v13 = vsel %vm264_vm2, 1.0, %v969_v5  ;;  %v778_v14 = vsel %vm272_vm3, 1.0, %v969_v5  ;;  %vm309_vm5 = vcmask 64512   ;;  %v539_v31 = vld [vmem:[%s1165_s7] sm:$0xff]  ;;  %v541_v34 = vld [vmem:[%s1165_s7 + $0x10] sm:$0xff]  ;;  %v542_v35 = vld [vmem:[%s1165_s7 + $0x18] sm:$0xff] }
   0x7   :  { %v914_v15 = vpack.i.bf16 %v1052_v13, %v778_v14  ;;  %v896_v33 = vpack.c.bf16 %v540_v32, %v539_v31  ;;  %v899_v36 = vpack.c.bf16 %v542_v35, %v541_v34  ;;  %v543_v37 = vld [vmem:[%s1165_s7 + $0x20] sm:$0xff]  ;;  %v544_v38 = vld [vmem:[%s1165_s7 + $0x28] sm:$0xff]  ;;  %v545_v40 = vld [vmem:[%s1165_s7 + $0x30] sm:$0xff]  ;;  %vm645_vm6 = vcmask 195584   ;;  %s737_s3 = sshll.u32 %s970_s1, 4  ;;  %s738_s3 = int_to_ptr.vmem [resolvable:$true] %s737_s3 }
   0x8   :  { %824 = vmatmul.mubr.msk.f32.vlgmr.msra.gmra.mrb[0].mxu1 %vm103_vm1, %v100_v11  ;;  %v902_v39 = vpack.c.bf16 %v544_v38, %v543_v37  ;;  %v546_v41 = vld [vmem:[%s1165_s7 + $0x38] sm:$0xff]  ;;  %v785_v46 = vld [vmem:[%s1164_s6] ss:$0 sm:$0xff]  ;;  %v534_v1 = vld [vmem:[%s1160_s2 + $0x8] sm:$0xff]  ;;  %s943_s21 = scalar_lea.vmem %s738_s3, 128  ;;  %p948_p1 = scmp.lt.s32.totalorder %s738_s3, %s738_s3 }
   0x9   :  { %894 = vmatpush3.bf16.msra.mxu1 %v893_v12  ;;  %830 = vmatprep.mubr.msk.f32.mxu1 %vm968_vm0, %v969_v5  ;;  %v905_v42 = vpack.c.bf16 %v546_v41, %v545_v40  ;;  %v533_v62 = vld [vmem:[%s1160_s2] sm:$0xff]  ;;  %v535_v4 = vld [vmem:[%s1160_s2 + $0x10] sm:$0xff]  ;;  %p944_p0 = scmp.ne.s32.totalorder %s738_s3, %s943_s21  ;;  %p949_p2 = scmp.lt.s32.totalorder %s943_s21, %s943_s21 }
   0xa   :  { %915 = vxpose.xlu0.b32.start.end [1/1] (short) (narrow) %v914_v15, 24  ;;  %844 = vmatprep.subr.mxu1 %v969_v5 }
   0xb   :  { %p950_p3 = por %p949_p2, %p948_p1 }
   0xc   :  { %831 = vmatmul.mubr.msk.f32.vlgmr.msra.gmra.mrb[2].mxu1 %vm103_vm1, %v100_v11 }
   0xd   :  { %846 = vmatprep.mubr.msk.f32.mxu1 %vm968_vm0, %v969_v5  ;;  %p951_p4 = pnand %p950_p3, %p944_p0 }
  0x8a   :  { %v916_v16 = vpop.trf.xlu0 }
  0x8b   :  { %v920_v23 = vunpack.i.h.bf16 %v916_v16  ;;  %v917_v25 = vunpack.i.l.bf16 %v916_v16 }
  0x8e   :  { %v921_v17 = vpop.trf.xlu0 }
  0x8f   :  { %v925_v26 = vunpack.i.h.bf16 %v921_v17  ;;  %v922_v28 = vunpack.i.l.bf16 %v921_v17 }
  0x92   :  { %v926_v18 = vpop.trf.xlu0 }
  0x93   :  { %v930_v29 = vunpack.i.h.bf16 %v926_v18  ;;  %v927_v30 = vunpack.i.l.bf16 %v926_v18 }
  0xdb   :  { %v173_v19 = vpop.f32.mrb[0].mxu1 }
  0xdc   :  { %178 = vst.msk [vmem:[#allocation2] sm:$0xff] %vm177_vm4, %v173_v19  ;;  %v825_v20 = vpop.f32.mrb[1].mxu1  ;;  %v644_v19 = vld [vmem:[#allocation4] sm:$0xff] }
  0xdf   :  { %v251_v21 = vpop.f32.mrb[2].mxu1 }
  0xe0   :  { %255 = vst.msk [vmem:[#allocation3] sm:$0xff] %vm177_vm4, %v251_v21  ;;  %v832_v22 = vpop.f32.mrb[3].mxu1 }
  0xe3   :  { %v275_v24 = vld [vmem:[#allocation2] sm:$0xff] }
  0xe4   :  { %845 = vmatpush3.msra.mxu1 %v275_v24 }
  0xe5   :  { %847 = vmatmul.mubr.msk.f32.vlgmr.msra.gmra.mrb[4].mxu1 %vm309_vm5, %v920_v23  ;;  %907 = vmatprep.subr.bf16.mxu1 %v967_v3 }
  0xe6   :  { %849 = vmatprep.mubr.msk.f32.mxu1 %vm968_vm0, %v969_v5 }
  0xe7   :  { %v276_v27 = vld [vmem:[#allocation3] sm:$0xff] }
  0xe8   :  { %834 = vmatpush3.msra.mxu0 %v276_v27 }
  0xe9   :  { %836 = vmatmul.mubr.msk.f32.vlgmr.msra.gmra.mrb[0].mxu0 %vm309_vm5, %v917_v25  ;;  %850 = vmatmul.mubr.msk.f32.gmra.mrb[6].mxu1 %vm309_vm5, %v925_v26 }
  0xea   :  { %838 = vmatprep.mubr.msk.f32.mxu0 %vm968_vm0, %v969_v5  ;;  %852 = vmatprep.mubr.msk.f32.mxu1 %vm968_vm0, %v969_v5 }
  0xeb   :  { %895 = vmatprep.subr.bf16.mxu0 %v967_v3 }
  0xec   :  { %897 = vmatpush3.bf16.msra.mxu0 %v896_v33 }
  0xed   :  { %839 = vmatmul.mubr.msk.f32.gmra.mrb[2].mxu0 %vm309_vm5, %v922_v28  ;;  %853 = vmatmul.mubr.msk.f32.gmra.mrb[8].mxu1 %vm309_vm5, %v930_v29 }
  0xee   :  { %841 = vmatprep.mubr.msk.f32.mxu0 %vm968_vm0, %v969_v5  ;;  %886 = vmatprep.mubr.msk.f32.mxu1 %vm968_vm0, %v969_v5 }
  0xef   :  { %898 = vmatprep.subr.bf16.mxu0 %v967_v3 }
  0xf0   :  { %900 = vmatpush3.bf16.msra.mxu0 %v899_v36 }
  0xf1   :  { %842 = vmatmul.mubr.msk.f32.gmra.mrb[4].mxu0 %vm309_vm5, %v927_v30  ;;  %901 = vmatprep.subr.bf16.mxu0 %v967_v3 }
  0xf2   :  { %871 = vmatprep.mubr.msk.f32.mxu0 %vm968_vm0, %v969_v5 }
  0xf4   :  { %903 = vmatpush3.bf16.msra.mxu0 %v902_v39 }
  0xf5   :  { %904 = vmatprep.subr.bf16.mxu0 %v967_v3 }
  0xf8   :  { %906 = vmatpush3.bf16.msra.mxu0 %v905_v42 }
 0x1b8   :  { %v506_v43 = vpop.f32.mrb[4].mxu1 }
 0x1b9   :  { %v848_v44 = vpop.f32.mrb[5].mxu1 }
 0x1bc   :  { %v385_v45 = vpop.f32.mrb[0].mxu0  ;;  %v511_v47 = vpop.f32.mrb[6].mxu1 }
 0x1bd   :  { %v507_v48 = vadd.f32 %v506_v43, %v385_v45  ;;  %v837_v49 = vpop.f32.mrb[1].mxu0  ;;  %v851_v50 = vpop.f32.mrb[7].mxu1 }
 0x1bf   :  { %v527_v51 = vadd.f32 %v785_v46, %v507_v48 }
 0x1c0   :  { %v390_v52 = vpop.f32.mrb[2].mxu0  ;;  %v516_v53 = vpop.f32.mrb[8].mxu1 }
 0x1c1   :  { %931 = vtanh.f32 %v527_v51  ;;  %v512_v54 = vadd.f32 %v511_v47, %v390_v52  ;;  %v840_v55 = vpop.f32.mrb[3].mxu0  ;;  %v854_v56 = vpop.f32.mrb[9].mxu1 }
 0x1c3   :  { %v528_v57 = vadd.f32 %v785_v46, %v512_v54 }
 0x1c4   :  { %v395_v58 = vpop.f32.mrb[4].mxu0 }
 0x1c5   :  { %933 = vtanh.f32 %v528_v57  ;;  %v517_v59 = vadd.f32 %v516_v53, %v395_v58  ;;  %v843_v60 = vpop.f32.mrb[5].mxu0 }
 0x1c7   :  { %v529_v61 = vadd.f32 %v785_v46, %v517_v59 }
 0x1c9   :  { %935 = vtanh.f32 %v529_v61 }
 0x1cb   :  { %v932_v63 = vpop.eup %931 }
 0x1cc   :  { %v536_v0 = vmul.f32 %v932_v63, %v533_v62 }
 0x1ce   :  { %872 = vmatmul.mubr.msk.f32.vlgmr.msra.gmra.mrb[6].mxu0 %vm177_vm4, %v536_v0 }
 0x1cf   :  { %v934_v2 = vpop.eup %933  ;;  %874 = vmatprep.mubr.msk.f32.mxu0 %vm968_vm0, %v969_v5 }
 0x1d0   :  { %v537_v3 = vmul.f32 %v934_v2, %v534_v1 }
 0x1d2   :  { %875 = vmatmul.mubr.msk.f32.gmra.mrb[8].mxu0 %vm177_vm4, %v537_v3 }
 0x1d3   :  { %v936_v6 = vpop.eup %935  ;;  %877 = vmatprep.mubr.msk.f32.mxu0 %vm968_vm0, %v969_v5 }
 0x1d4   :  { %v538_v7 = vmul.f32 %v936_v6, %v535_v4 }
 0x1d6   :  { %878 = vmatmul.mubr.msk.f32.gmra.mrb[10].mxu0 %vm177_vm4, %v538_v7 }
 0x2a1   :  { %v623_v8 = vpop.f32.mrb[6].mxu0 }
 0x2a2   :  { %937 = vtanh.f32 %v623_v8  ;;  %v873_v9 = vpop.f32.mrb[7].mxu0 }
 0x2a5   :  { %v628_v10 = vpop.f32.mrb[8].mxu0 }
 0x2a6   :  { %939 = vtanh.f32 %v628_v10  ;;  %v876_v11 = vpop.f32.mrb[9].mxu0 }
 0x2a9   :  { %v633_v12 = vpop.f32.mrb[10].mxu0 }
 0x2aa   :  { %941 = vtanh.f32 %v633_v12  ;;  %v879_v14 = vpop.f32.mrb[11].mxu0 }
 0x2ac   :  { %v938_v15 = vpop.eup %937 }
 0x2ad   :  { %641 = vst.msk [vmem:[%s1166_s8] sm:$0xff] %vm103_vm1, %v938_v15 }
 0x2b0   :  { %v940_v16 = vpop.eup %939 }
 0x2b1   :  { %642 = vst.msk [vmem:[%s1166_s8 + $0x8] sm:$0xff] %vm103_vm1, %v940_v16  ;;  %v908_v17 = vpack.c.bf16 %v940_v16, %v938_v15 }
 0x2b3   :  { %909 = vmatpush3.bf16.msra.mxu1 %v908_v17 }
 0x2b4   :  { %v942_v18 = vpop.eup %941  ;;  %884 = vmatprep.subr.mxu1 %v969_v5 }
 0x2b5   :  { %643 = vst.msk [vmem:[%s1166_s8 + $0x10] sm:$0xff] %vm103_vm1, %v942_v18 }
 0x2b7   :  { %885 = vmatpush3.msra.mxu1 %v942_v18 }
 0x2b8   :  { %887 = vmatmul.mubr.msk.f32.vlgmr.msra.gmra.mrb[10].mxu1 %vm645_vm6, %v1052_v13 }
 0x38b   :  { %v715_v20 = vpop.f32.mrb[10].mxu1 }
 0x38c   :  { %v719_v21 = vadd.f32 %v715_v20, %v644_v19  ;;  %v888_v22 = vpop.f32.mrb[11].mxu1 }
 0x38e   :  { %720 = vst.msk [vmem:[#allocation4] sm:$0xff] %vm103_vm1, %v719_v21 }
 0x38f   :  { %954 = shalt.err (!%p951_p4)
}
 0x390   :  { %s955_s23 = scalar_lea.hbm %s1167_s9, 128 }
 0x391   :  { %p956_p5 = scmp.ne.s32.totalorder %s1167_s9, %s955_s23  ;;  %p959_p6 = scmp.lt.u32.totalorder %s955_s23, %s1167_s9 }
 0x393   :  { %p961_p7 = pnand %p959_p6, %p956_p5 }
 0x395   :  { %964 = shalt.err (!%p961_p7)
}
 0x396   :  { %740 = dma.vmem_to_hbm [thread:$0]  %s738_s3, 128, %s1167_s9, [#allocation5]  }
 0x397   :  { %965 = dma.done.wait [#allocation5], 128  }
 0x398   :  { %966 = vsyncadd [#allocation5], 4294967168 }
 0x399   :  { %752 = vsyncpa [#allocation5], 1 }

</bundles_post_ra>
